<compile_context>
chip_gen: v7x
topology: tpu7x:2x2x1
jax: 0.10.0
libtpu: 0.0.40
codegen_flags: <defaults>
</compile_context>

<pallas_src>
import functools
import math

import jax
import jax.numpy as jnp
from jax.experimental import pallas as pl
from jax.experimental.pallas import tpu as pltpu

_LANE = 128


def _round_up(x, m):
    return ((x + m - 1) // m) * m


# -----------------------------------------------------------------------------
# Kernels
# -----------------------------------------------------------------------------
def _addnorm_kernel(x_ref, y_ref, gb_ref, o_ref, *, eps):
    """Simple path: one original row per sublane row, normalize over lanes.

    Tail grid steps may compute on uninitialized padded rows (possibly NaN/Inf
    through rsqrt); rows are independent and the padded writes are discarded
    by Pallas edge masking, so this is benign.
    """
    f32 = jnp.float32
    # Residual connection (dropout is identity in eval mode).
    z = x_ref[...].astype(f32) + y_ref[...].astype(f32)             # (bm, D)
    # LayerNorm over last axis: biased variance, eps inside rsqrt -- exactly
    # torch.nn.LayerNorm.  Two-pass centered variance for stability; the extra
    # VPU work is free filler on a memory-bound kernel.
    mean = jnp.mean(z, axis=-1, keepdims=True)
    centered = z - mean
    var = jnp.mean(centered * centered, axis=-1, keepdims=True)
    inv = jax.lax.rsqrt(var + eps)                                   # EUP slot
    gb = gb_ref[...].astype(f32)                                     # (2, D)
    o_ref[...] = (centered * inv * gb[0:1, :] + gb[1:2, :]).astype(o_ref.dtype)


def _addnorm_dense_kernel(x_ref, y_ref, gb_ref, seg_ref, o_ref, *, eps, d):
    """Lane-dense path: `fold` original rows packed along the lane axis so the
    last dim (fold*D) is a multiple of 128.  Per-segment (length-D) sums are
    one matmul against a block-diagonal ones matrix on the otherwise-idle MXU,
    so loads/stores are full-width (no vst.msk partial stores) and there is no
    XLU cross-lane reduce over mostly-empty vregs.

    Tail grid steps may see uninitialized padded rows (NaN/Inf through rsqrt);
    each length-D segment lives within one packed row, so valid rows are never
    contaminated and the padded writes are discarded -- benign.
    """
    f32 = jnp.float32
    z = x_ref[...].astype(f32) + y_ref[...].astype(f32)              # (bm, W)
    seg = seg_ref[...]                                               # (W, W)
    inv_d = 1.0 / float(d)
    mean = jnp.dot(z, seg, preferred_element_type=f32) * inv_d       # seg mean
    centered = z - mean
    var = jnp.dot(centered * centered, seg, preferred_element_type=f32) * inv_d
    inv = jax.lax.rsqrt(var + eps)
    gb = gb_ref[...].astype(f32)                                     # (2, W)
    o_ref[...] = (centered * inv * gb[0:1, :] + gb[1:2, :]).astype(o_ref.dtype)


# -----------------------------------------------------------------------------
# Sizing helpers
# -----------------------------------------------------------------------------
def _vmem_budget_bytes():
    try:
        info = pltpu.get_tpu_info()
        cap = int(getattr(info, "vmem_capacity_bytes", 64 * 1024 * 1024))
    except Exception:
        cap = 64 * 1024 * 1024  # v7x per-TC (the smallest generation)
    # <= 56 MiB on 128-MiB parts (v5e/v6e), 32 MiB on 64-MiB v7x; leaves
    # headroom for compiler scratch.  Do NOT use cap//2 blindly.
    return max(16 * 1024 * 1024, min(cap // 2, 56 * 1024 * 1024))


def _pick_block_rows(rows, lane_width, io_itemsize, sublane, vmem_budget,
                     fixed_bytes=0):
    """Largest sublane-aligned row tile whose *real* VMEM footprint fits.

    Real footprint per row uses the lane-padded width (VMEM stores (8,128)
    tiles, so a 24-wide row still occupies 128 lanes) and counts:
      * 2 inputs + 1 output, double-buffered          -> 6 I/O tiles
      * ~4 block-sized f32 intermediates (z, centered, squares, pre-cast out)
    `fixed_bytes` covers grid-invariant operands (gamma/beta, seg matrix).
    """
    padded_lane = _round_up(lane_width, _LANE)
    per_row = 6 * padded_lane * io_itemsize + 4 * padded_lane * 4
    budget = max(vmem_budget - fixed_bytes, 4 * 1024 * 1024)
    max_rows = max(sublane, budget // per_row)
    # Amortize the ~0.35us per-grid-step overhead with multi-MiB tiles.
    target_tile_bytes = max(2 * 1024 * 1024, min(8 * 1024 * 1024, budget // 8))
    target_rows = max(sublane, target_tile_bytes // (padded_lane * io_itemsize))
    block = int(min(max_rows, target_rows))
    block = max(sublane, (block // sublane) * sublane)
    if block >= rows:
        # Whole problem fits one step: single full-extent block, grid=(1,).
        # (A full-dim block is always legal regardless of sublane alignment.)
        return int(rows)
    return int(block)


# -----------------------------------------------------------------------------
# Wrapper
# -----------------------------------------------------------------------------
def add_norm(x, y, gamma, beta, *, eps=1e-5, block_rows=None, lane_dense=None):
    """x, y: (..., D); gamma, beta: (D,). Returns LayerNorm(y + x) over D."""
    assert x.shape == y.shape, "residual inputs must match"
    orig_shape = x.shape
    D = orig_shape[-1]
    rows = int(math.prod(orig_shape[:-1])) if len(orig_shape) > 1 else 1
    dtype = x.dtype
    itemsize = jnp.dtype(dtype).itemsize
    # Min sublane tile: 8 for 4-byte dtypes, 16 for bf16/f16, 32 for int8/fp8.
    sublane = 8 if itemsize >= 4 else (16 if itemsize == 2 else 32)

    vmem_budget = _vmem_budget_bytes()

    # Lane-dense fold: pack `fold` rows along lanes so the last dim is a
    # multiple of 128 (lcm(D, 128) / D).
    fold = 1
    if D % _LANE != 0:
        fold = (D * _LANE // math.gcd(D, _LANE)) // D
    can_dense = fold > 1 and fold * D <= 4096 and rows % fold == 0
    if lane_dense is None:
        # Only worth it once the on-chip path (not per-call overhead) is
        # visible; masked vst.msk stores matter most on v5e (1 store slot).
        lane_dense = can_dense and rows * D * itemsize >= (4 << 20)
    lane_dense = bool(lane_dense) and can_dense

    x2 = x.reshape(rows, D)  # free row-major view
    y2 = y.reshape(rows, D)

    compiler_params = pltpu.CompilerParams(
        dimension_semantics=("parallel",),
        vmem_limit_bytes=int(vmem_budget),
    )

    if lane_dense:
        W = fold * D
        rows_f = rows // fold
        xw = x2.reshape(rows_f, W)  # free row-major view
        yw = y2.reshape(rows_f, W)
        gb = jnp.stack([jnp.tile(gamma.astype(jnp.float32), fold),
                        jnp.tile(beta.astype(jnp.float32), fold)], axis=0)
        seg_id = jnp.arange(W, dtype=jnp.int32) // D
        seg = (seg_id[:, None] == seg_id[None, :]).astype(jnp.float32)  # (W, W)
        fixed = 2 * (W * W * 4 + 2 * W * 4)  # seg + gb, double-buffered
        if block_rows is None:
            block_rows = _pick_block_rows(rows_f, W, itemsize, sublane,
                                          vmem_budget, fixed_bytes=fixed)
        grid = (pl.cdiv(rows_f, block_rows),)
        out = pl.pallas_call(
            functools.partial(_addnorm_dense_kernel, eps=eps, d=D),
            out_shape=jax.ShapeDtypeStruct((rows_f, W), dtype),
            grid_spec=pltpu.PrefetchScalarGridSpec(
                num_scalar_prefetch=0,
                grid=grid,
                in_specs=[
                    pl.BlockSpec((block_rows, W), lambda i: (i, 0)),  # X tile
                    pl.BlockSpec((block_rows, W), lambda i: (i, 0)),  # Y tile
                    pl.BlockSpec((2, W), lambda i: (0, 0)),           # gamma/beta
                    pl.BlockSpec((W, W), lambda i: (0, 0)),           # seg matrix
                ],
                out_specs=pl.BlockSpec((block_rows, W), lambda i: (i, 0)),
            ),
            compiler_params=compiler_params,
        )(xw, yw, gb, seg)
        return out.reshape(orig_shape)

    # Simple path (small / unaligned workloads).
    gb = jnp.stack([gamma.astype(jnp.float32),
                    beta.astype(jnp.float32)], axis=0)                # (2, D)
    if block_rows is None:
        block_rows = _pick_block_rows(rows, D, itemsize, sublane, vmem_budget,
                                      fixed_bytes=2 * 2 * _round_up(D, _LANE) * 4)
    grid = (pl.cdiv(rows, block_rows),)
    out = pl.pallas_call(
        functools.partial(_addnorm_kernel, eps=eps),
        out_shape=jax.ShapeDtypeStruct((rows, D), dtype),
        grid_spec=pltpu.PrefetchScalarGridSpec(
            num_scalar_prefetch=0,
            grid=grid,
            in_specs=[
                pl.BlockSpec((block_rows, D), lambda i: (i, 0)),      # X tile
                pl.BlockSpec((block_rows, D), lambda i: (i, 0)),      # Y tile
                pl.BlockSpec((2, D), lambda i: (0, 0)),               # gamma/beta
            ],
            out_specs=pl.BlockSpec((block_rows, D), lambda i: (i, 0)),
        ),
        compiler_params=compiler_params,
    )(x2, y2, gb)
    return out.reshape(orig_shape)


# -----------------------------------------------------------------------------
# Self-test
# -----------------------------------------------------------------------------
def _reference(x, y, gamma, beta, eps=1e-5):
    z = y + x  # eval-mode dropout == identity
    mean = jnp.mean(z, axis=-1, keepdims=True)
    var = jnp.mean((z - mean) ** 2, axis=-1, keepdims=True)
    return (z - mean) * jax.lax.rsqrt(var + eps) * gamma + beta


if __name__ == "__main__":
    key = jax.random.PRNGKey(0)
    kx, ky, kg, kb, kx2, ky2 = jax.random.split(key, 6)

    # ---- Case 1: shapes of the original module (X = torch.ones((2,100,24))).
    B, S, D = 2, 100, 24
    x = jax.random.normal(kx, (B, S, D), dtype=jnp.float32)
    y = jax.random.normal(ky, (B, S, D), dtype=jnp.float32)
    gamma = jnp.ones((D,), jnp.float32) + 0.1 * jax.random.normal(kg, (D,), jnp.float32)
    beta = 0.1 * jax.random.normal(kb, (D,), jnp.float32)

    out = jax.block_until_ready(add_norm(x, y, gamma, beta))
    ref = _reference(x, y, gamma, beta)
    assert jnp.allclose(out, ref, atol=2e-5, rtol=2e-5), "simple-path mismatch"

    # ---- Case 2: lane-dense path (forced) at a small aligned shape.
    B2, S2 = 4, 128  # rows = 512, divisible by fold = 16 -> 384 lanes
    xd = jax.random.normal(kx2, (B2, S2, D), dtype=jnp.float32)
    yd = jax.random.normal(ky2, (B2, S2, D), dtype=jnp.float32)
    outd = jax.block_until_ready(add_norm(xd, yd, gamma, beta, lane_dense=True))
    refd = _reference(xd, yd, gamma, beta)
    assert jnp.allclose(outd, refd, atol=1e-4, rtol=1e-4), "dense-path mismatch"

    print("KERNEL_OK")
</pallas_src>

<mosaic_0001>
module attributes {stable_mosaic.version = 11 : i64} {
  func.func @_addnorm_kernel(%arg0: i32, %arg1: memref<200x24xf32, #tpu.memory_space<vmem>>, %arg2: memref<200x24xf32, #tpu.memory_space<vmem>>, %arg3: memref<2x24xf32, #tpu.memory_space<vmem>>, %arg4: memref<200x24xf32, #tpu.memory_space<vmem>>) attributes {dimension_semantics = [#tpu.dimension_semantics<parallel>], iteration_bounds = array<i64: 1>, scalar_prefetch = 0 : i64, scratch_operands = 0 : i64, tpu.core_type = #tpu.core_type<tc>, window_params = [{transform_indices = @transform_0, window_bounds = array<i64: 200, 24>}, {transform_indices = @transform_1, window_bounds = array<i64: 200, 24>}, {pipeline_mode = #tpu.pipeline_mode<synchronous>, transform_indices = @transform_2, window_bounds = array<i64: 2, 24>}, {transform_indices = @transform_3, window_bounds = array<i64: 200, 24>}]} {
    %c0 = arith.constant 0 : index
    %c0_0 = arith.constant 0 : index
    %0 = vector.load %arg1[%c0, %c0_0] : memref<200x24xf32, #tpu.memory_space<vmem>>, vector<200x24xf32>
    %c0_1 = arith.constant 0 : index
    %c0_2 = arith.constant 0 : index
    %1 = vector.load %arg2[%c0_1, %c0_2] : memref<200x24xf32, #tpu.memory_space<vmem>>, vector<200x24xf32>
    %2 = arith.addf %0, %1 : vector<200x24xf32>
    %cst = arith.constant dense<0.000000e+00> : vector<200xf32>
    %3 = vector.multi_reduction <add>, %2, %cst [1] : vector<200x24xf32> to vector<200xf32>
    %4 = vector.shape_cast %3 : vector<200xf32> to vector<200x1xf32>
    %cst_3 = arith.constant 2.400000e+01 : f32
    %5 = vector.broadcast %cst_3 : f32 to vector<200x1xf32>
    %6 = arith.divf %4, %5 : vector<200x1xf32>
    %7 = vector.broadcast %6 : vector<200x1xf32> to vector<200x24xf32>
    %8 = arith.subf %2, %7 : vector<200x24xf32>
    %9 = arith.mulf %8, %8 : vector<200x24xf32>
    %cst_4 = arith.constant dense<0.000000e+00> : vector<200xf32>
    %10 = vector.multi_reduction <add>, %9, %cst_4 [1] : vector<200x24xf32> to vector<200xf32>
    %11 = vector.shape_cast %10 : vector<200xf32> to vector<200x1xf32>
    %cst_5 = arith.constant 2.400000e+01 : f32
    %12 = vector.broadcast %cst_5 : f32 to vector<200x1xf32>
    %13 = arith.divf %11, %12 : vector<200x1xf32>
    %cst_6 = arith.constant 9.99999974E-6 : f32
    %14 = vector.broadcast %cst_6 : f32 to vector<200x1xf32>
    %15 = arith.addf %13, %14 : vector<200x1xf32>
    %16 = math.rsqrt %15 : vector<200x1xf32>
    %c0_7 = arith.constant 0 : index
    %c0_8 = arith.constant 0 : index
    %17 = vector.load %arg3[%c0_7, %c0_8] : memref<2x24xf32, #tpu.memory_space<vmem>>, vector<2x24xf32>
    %18 = vector.broadcast %16 : vector<200x1xf32> to vector<200x24xf32>
    %19 = arith.mulf %8, %18 : vector<200x24xf32>
    %20 = vector.extract_strided_slice %17 {offsets = [0, 0], sizes = [1, 24], strides = [1, 1]} : vector<2x24xf32> to vector<1x24xf32>
    %21 = vector.broadcast %20 : vector<1x24xf32> to vector<200x24xf32>
    %22 = arith.mulf %19, %21 : vector<200x24xf32>
    %23 = vector.extract_strided_slice %17 {offsets = [1, 0], sizes = [1, 24], strides = [1, 1]} : vector<2x24xf32> to vector<1x24xf32>
    %24 = vector.broadcast %23 : vector<1x24xf32> to vector<200x24xf32>
    %25 = arith.addf %22, %24 : vector<200x24xf32>
    %c0_9 = arith.constant 0 : index
    %c0_10 = arith.constant 0 : index
    %26 = vector.load %arg4[%c0_9, %c0_10] : memref<200x24xf32, #tpu.memory_space<vmem>>, vector<200x24xf32>
    tpu.vector_store %arg4[%c0_9, %c0_10], %25 {strides = array<i32>} : memref<200x24xf32, #tpu.memory_space<vmem>>, vector<200x24xf32>,
    return
  }
  func.func @transform_0(%arg0: i32) -> (i32, i32) {
    %c0_i32 = arith.constant 0 : i32
    %c0_i32_0 = arith.constant 0 : i32
    return %arg0, %c0_i32 : i32, i32
  }
  func.func @transform_1(%arg0: i32) -> (i32, i32) {
    %c0_i32 = arith.constant 0 : i32
    %c0_i32_0 = arith.constant 0 : i32
    return %arg0, %c0_i32 : i32, i32
  }
  func.func @transform_2(%arg0: i32) -> (i32, i32) {
    %c0_i32 = arith.constant 0 : i32
    %c0_i32_0 = arith.constant 0 : i32
    %c0_i32_1 = arith.constant 0 : i32
    return %c0_i32, %c0_i32_0 : i32, i32
  }
  func.func @transform_3(%arg0: i32) -> (i32, i32) {
    %c0_i32 = arith.constant 0 : i32
    %c0_i32_0 = arith.constant 0 : i32
    return %arg0, %c0_i32 : i32, i32
  }
}

</mosaic_0001>

<bundles_post_ra>
// kernel: tpu_custom_call.1
= control target key start
LH: loop header
LB: loop body
LE: loop exit
PB: predicated region body
PF: predicated region fallthrough
CT: control target
= control target key end

     0   :  { %vm89_vm0 = vcmask 195584   ;;  %s1156_s0 = inlined_call_operand.vmem [shape: f32[200,24], index: 0, kind: input, shape index: {}]   ;;  %s1157_s1 = inlined_call_operand.vmem [shape: f32[200,24], index: 1, kind: input, shape index: {}]   ;;  %s1158_s2 = inlined_call_operand.vmem [shape: f32[2,24], index: 2, kind: input, shape index: {}]   ;;  %s1159_s3 = inlined_call_operand.vmem [shape: f32[200,24], index: 3, kind: output, shape index: {}]  }
   0x1   :  { %v14_v0 = vld [vmem:[%s1156_s0] sm:$0xff]  ;;  %v16_v2 = vld [vmem:[%s1156_s0 + $0x10] sm:$0xff]  ;;  %v15_v5 = vld [vmem:[%s1156_s0 + $0x8] sm:$0xff] }
   0x2   :  { %v39_v1 = vld [vmem:[%s1157_s1] sm:$0xff]  ;;  %v41_v4 = vld [vmem:[%s1157_s1 + $0x10] sm:$0xff]  ;;  %v40_v6 = vld [vmem:[%s1157_s1 + $0x8] sm:$0xff] }
   0x3   :  { %v583_v3 = vadd.f32 %v39_v1, %v14_v0  ;;  %v594_v7 = vadd.f32 %v41_v4, %v16_v2  ;;  %v596_v8 = vadd.f32 %v40_v6, %v15_v5  ;;  %v17_v9 = vld [vmem:[%s1156_s0 + $0x18] sm:$0xff]  ;;  %v18_v11 = vld [vmem:[%s1156_s0 + $0x20] sm:$0xff]  ;;  %v19_v15 = vld [vmem:[%s1156_s0 + $0x28] sm:$0xff] }
   0x4   :  { %v42_v10 = vld [vmem:[%s1157_s1 + $0x18] sm:$0xff]  ;;  %v43_v14 = vld [vmem:[%s1157_s1 + $0x20] sm:$0xff]  ;;  %v44_v16 = vld [vmem:[%s1157_s1 + $0x28] sm:$0xff] }
   0x5   :  { %v90_v12 = vsel %vm89_vm0, %v583_v3, 0.0  ;;  %v609_v13 = vadd.f32 %v42_v10, %v17_v9  ;;  %v96_v17 = vsel %vm89_vm0, %v594_v7, 0.0  ;;  %v93_v18 = vsel %vm89_vm0, %v596_v8, 0.0  ;;  %v20_v22 = vld [vmem:[%s1156_s0 + $0x30] sm:$0xff]  ;;  %v21_v24 = vld [vmem:[%s1156_s0 + $0x38] sm:$0xff]  ;;  %v22_v30 = vld [vmem:[%s1156_s0 + $0x40] sm:$0xff] }
   0x6   :  { %91 = vadd.xlane.f32.xlu0 %v90_v12  ;;  %97 = vadd.xlane.f32.xlu1 %v96_v17  ;;  %v624_v19 = vadd.f32 %v43_v14, %v18_v11  ;;  %v628_v21 = vadd.f32 %v44_v16, %v19_v15  ;;  %v45_v23 = vld [vmem:[%s1157_s1 + $0x30] sm:$0xff]  ;;  %v46_v25 = vld [vmem:[%s1157_s1 + $0x38] sm:$0xff]  ;;  %v47_v31 = vld [vmem:[%s1157_s1 + $0x40] sm:$0xff] }
   0x7   :  { %v99_v20 = vsel %vm89_vm0, %v609_v13, 0.0  ;;  %v644_v27 = vadd.f32 %v45_v23, %v20_v22  ;;  %v648_v29 = vadd.f32 %v46_v25, %v21_v24  ;;  %v23_v32 = vld [vmem:[%s1156_s0 + $0x48] sm:$0xff]  ;;  %v664_v35 = vadd.f32 %v47_v31, %v22_v30  ;;  %v24_v38 = vld [vmem:[%s1156_s0 + $0x50] sm:$0xff]  ;;  %v25_v40 = vld [vmem:[%s1156_s0 + $0x58] sm:$0xff] }
   0x8   :  { %v102_v26 = vsel %vm89_vm0, %v624_v19, 0.0  ;;  %v105_v28 = vsel %vm89_vm0, %v628_v21, 0.0  ;;  %v48_v33 = vld [vmem:[%s1157_s1 + $0x48] sm:$0xff]  ;;  %v49_v39 = vld [vmem:[%s1157_s1 + $0x50] sm:$0xff]  ;;  %v50_v41 = vld [vmem:[%s1157_s1 + $0x58] sm:$0xff] }
   0x9   :  { %v108_v34 = vsel %vm89_vm0, %v644_v27, 0.0  ;;  %v111_v36 = vsel %vm89_vm0, %v648_v29, 0.0  ;;  %v668_v37 = vadd.f32 %v48_v33, %v23_v32  ;;  %v114_v42 = vsel %vm89_vm0, %v664_v35, 0.0  ;;  %v26_v46 = vld [vmem:[%s1156_s0 + $0x60] sm:$0xff]  ;;  %v27_v48 = vld [vmem:[%s1156_s0 + $0x68] sm:$0xff]  ;;  %v28_v54 = vld [vmem:[%s1156_s0 + $0x70] sm:$0xff] }
   0xa   :  { %94 = vadd.xlane.f32.xlu0 %v93_v18  ;;  %100 = vadd.xlane.f32.xlu1 %v99_v20  ;;  %v684_v43 = vadd.f32 %v49_v39, %v24_v38  ;;  %v688_v45 = vadd.f32 %v50_v41, %v25_v40  ;;  %v51_v47 = vld [vmem:[%s1157_s1 + $0x60] sm:$0xff]  ;;  %v52_v49 = vld [vmem:[%s1157_s1 + $0x68] sm:$0xff]  ;;  %v53_v55 = vld [vmem:[%s1157_s1 + $0x70] sm:$0xff] }
   0xb   :  { %v117_v44 = vsel %vm89_vm0, %v668_v37, 0.0  ;;  %v704_v51 = vadd.f32 %v51_v47, %v26_v46  ;;  %v708_v53 = vadd.f32 %v52_v49, %v27_v48  ;;  %v29_v56 = vld [vmem:[%s1156_s0 + $0x78] sm:$0xff]  ;;  %v724_v59 = vadd.f32 %v53_v55, %v28_v54  ;;  %v30_v62 = vld [vmem:[%s1156_s0 + $0x80] sm:$0xff]  ;;  %v31_v0 = vld [vmem:[%s1156_s0 + $0x88] sm:$0xff] }
   0xc   :  { %v120_v50 = vsel %vm89_vm0, %v684_v43, 0.0  ;;  %v123_v52 = vsel %vm89_vm0, %v688_v45, 0.0  ;;  %v54_v57 = vld [vmem:[%s1157_s1 + $0x78] sm:$0xff]  ;;  %v55_v63 = vld [vmem:[%s1157_s1 + $0x80] sm:$0xff]  ;;  %v56_v1 = vld [vmem:[%s1157_s1 + $0x88] sm:$0xff] }
   0xd   :  { %v126_v58 = vsel %vm89_vm0, %v704_v51, 0.0  ;;  %v129_v60 = vsel %vm89_vm0, %v708_v53, 0.0  ;;  %v728_v61 = vadd.f32 %v54_v57, %v29_v56  ;;  %v132_v2 = vsel %vm89_vm0, %v724_v59, 0.0  ;;  %v32_v9 = vld [vmem:[%s1156_s0 + $0x90] sm:$0xff]  ;;  %v33_v11 = vld [vmem:[%s1156_s0 + $0x98] sm:$0xff]  ;;  %v34_v18 = vld [vmem:[%s1156_s0 + $0xa0] sm:$0xff] }
   0xe   :  { %103 = vadd.xlane.f32.xlu0 %v102_v26  ;;  %106 = vadd.xlane.f32.xlu1 %v105_v28  ;;  %v744_v4 = vadd.f32 %v55_v63, %v30_v62  ;;  %v748_v6 = vadd.f32 %v56_v1, %v31_v0  ;;  %v57_v10 = vld [vmem:[%s1157_s1 + $0x90] sm:$0xff]  ;;  %v58_v12 = vld [vmem:[%s1157_s1 + $0x98] sm:$0xff]  ;;  %v59_v20 = vld [vmem:[%s1157_s1 + $0xa0] sm:$0xff] }
   0xf   :  { %v135_v5 = vsel %vm89_vm0, %v728_v61, 0.0  ;;  %v764_v15 = vadd.f32 %v57_v10, %v32_v9  ;;  %v768_v17 = vadd.f32 %v58_v12, %v33_v11  ;;  %v35_v22 = vld [vmem:[%s1156_s0 + $0xa8] sm:$0xff]  ;;  %v784_v25 = vadd.f32 %v59_v20, %v34_v18  ;;  %v36_v30 = vld [vmem:[%s1156_s0 + $0xb0] sm:$0xff]  ;;  %v37_v32 = vld [vmem:[%s1156_s0 + $0xb8] sm:$0xff] }
  0x10   :  { %v138_v14 = vsel %vm89_vm0, %v744_v4, 0.0  ;;  %v141_v16 = vsel %vm89_vm0, %v748_v6, 0.0  ;;  %v60_v23 = vld [vmem:[%s1157_s1 + $0xa8] sm:$0xff]  ;;  %v61_v31 = vld [vmem:[%s1157_s1 + $0xb0] sm:$0xff]  ;;  %v62_v33 = vld [vmem:[%s1157_s1 + $0xb8] sm:$0xff] }
  0x11   :  { %v144_v24 = vsel %vm89_vm0, %v764_v15, 0.0  ;;  %v147_v26 = vsel %vm89_vm0, %v768_v17, 0.0  ;;  %v788_v28 = vadd.f32 %v60_v23, %v35_v22  ;;  %v808_v39 = vadd.f32 %v62_v33, %v37_v32  ;;  %v38_v40 = vld [vmem:[%s1156_s0 + $0xc0] sm:$0xff] }
  0x12   :  { %109 = vadd.xlane.f32.xlu0 %v108_v34  ;;  %112 = vadd.xlane.f32.xlu1 %v111_v36  ;;  %v150_v34 = vsel %vm89_vm0, %v784_v25, 0.0  ;;  %v804_v36 = vadd.f32 %v61_v31, %v36_v30  ;;  %v63_v41 = vld [vmem:[%s1157_s1 + $0xc0] sm:$0xff] }
  0x13   :  { %v153_v38 = vsel %vm89_vm0, %v788_v28, 0.0  ;;  %v159_v46 = vsel %vm89_vm0, %v808_v39, 0.0 }
  0x16   :  { %115 = vadd.xlane.f32.xlu0 %v114_v42  ;;  %118 = vadd.xlane.f32.xlu1 %v117_v44  ;;  %v156_v42 = vsel %vm89_vm0, %v804_v36, 0.0  ;;  %v818_v44 = vadd.f32 %v63_v41, %v38_v40 }
  0x18   :  { %v162_v47 = vsel %vm89_vm0, %v818_v44, 0.0 }
  0x1a   :  { %121 = vadd.xlane.f32.xlu0 %v120_v50  ;;  %124 = vadd.xlane.f32.xlu1 %v123_v52 }
  0x1e   :  { %127 = vadd.xlane.f32.xlu0 %v126_v58  ;;  %130 = vadd.xlane.f32.xlu1 %v129_v60 }
  0x22   :  { %133 = vadd.xlane.f32.xlu0 %v132_v2  ;;  %136 = vadd.xlane.f32.xlu1 %v135_v5 }
  0x26   :  { %139 = vadd.xlane.f32.xlu0 %v138_v14  ;;  %142 = vadd.xlane.f32.xlu1 %v141_v16 }
  0x2a   :  { %145 = vadd.xlane.f32.xlu0 %v144_v24  ;;  %148 = vadd.xlane.f32.xlu1 %v147_v26 }
  0x2e   :  { %151 = vadd.xlane.f32.xlu0 %v150_v34  ;;  %154 = vadd.xlane.f32.xlu1 %v153_v38 }
  0x32   :  { %157 = vadd.xlane.f32.xlu0 %v156_v42  ;;  %160 = vadd.xlane.f32.xlu1 %v159_v46 }
  0x36   :  { %163 = vadd.xlane.f32.xlu0 %v162_v47 }
  0x93   :  { %v92_v48 = vpop.xlane.xlu0 %91  ;;  %v98_v50 = vpop.xlane.xlu1 %97 }
  0x94   :  { %v166_v49 = vmul.f32 0.041666668, %v92_v48  ;;  %v168_v52 = vmul.f32 0.041666668, %v98_v50 }
  0x96   :  { %v825_v54 = vsub.f32 %v583_v3, %v166_v49  ;;  %v828_v55 = vsub.f32 %v594_v7, %v168_v52 }
  0x97   :  { %v95_v56 = vpop.xlane.xlu0 %94  ;;  %v101_v58 = vpop.xlane.xlu1 %100 }
  0x98   :  { %v167_v57 = vmul.f32 0.041666668, %v95_v56  ;;  %v216_v60 = vmul.f32 %v825_v54, %v825_v54  ;;  %v169_v62 = vmul.f32 0.041666668, %v101_v58  ;;  %v218_v63 = vmul.f32 %v828_v55, %v828_v55 }
  0x9a   :  { %v835_v0 = vsub.f32 %v596_v8, %v167_v57  ;;  %v241_v1 = vsel %vm89_vm0, %v216_v60, 0.0  ;;  %v839_v3 = vsub.f32 %v609_v13, %v169_v62  ;;  %v247_v9 = vsel %vm89_vm0, %v218_v63, 0.0 }
  0x9b   :  { %242 = vadd.xlane.f32.xlu1 %v241_v1  ;;  %v104_v7 = vpop.xlane.xlu0 %103  ;;  %v107_v5 = vpop.xlane.xlu1 %106 }
  0x9c   :  { %v170_v2 = vmul.f32 0.041666668, %v104_v7  ;;  %v217_v10 = vmul.f32 %v835_v0, %v835_v0  ;;  %v171_v11 = vmul.f32 0.041666668, %v107_v5  ;;  %v219_v12 = vmul.f32 %v839_v3, %v839_v3 }
  0x9e   :  { %v847_v8 = vsub.f32 %v624_v19, %v170_v2  ;;  %v244_v14 = vsel %vm89_vm0, %v217_v10, 0.0  ;;  %v851_v13 = vsub.f32 %v628_v21, %v171_v11  ;;  %v250_v22 = vsel %vm89_vm0, %v219_v12, 0.0 }
  0x9f   :  { %248 = vadd.xlane.f32.xlu1 %v247_v9  ;;  %245 = vadd.xlane.f32.xlu0 %v244_v14  ;;  %v110_v16 = vpop.xlane.xlu0 %109  ;;  %v113_v20 = vpop.xlane.xlu1 %112 }
  0xa0   :  { %v172_v18 = vmul.f32 0.041666668, %v110_v16  ;;  %v220_v23 = vmul.f32 %v847_v8, %v847_v8  ;;  %v173_v24 = vmul.f32 0.041666668, %v113_v20  ;;  %v221_v19 = vmul.f32 %v851_v13, %v851_v13 }
  0xa2   :  { %v859_v26 = vsub.f32 %v644_v27, %v172_v18  ;;  %v253_v21 = vsel %vm89_vm0, %v220_v23, 0.0  ;;  %v863_v30 = vsub.f32 %v648_v29, %v173_v24  ;;  %v256_v34 = vsel %vm89_vm0, %v221_v19, 0.0 }
  0xa3   :  { %251 = vadd.xlane.f32.xlu0 %v250_v22  ;;  %254 = vadd.xlane.f32.xlu1 %v253_v21  ;;  %v116_v31 = vpop.xlane.xlu0 %115  ;;  %v119_v33 = vpop.xlane.xlu1 %118 }
  0xa4   :  { %v174_v32 = vmul.f32 0.041666668, %v116_v31  ;;  %v222_v38 = vmul.f32 %v859_v26, %v859_v26  ;;  %v175_v40 = vmul.f32 0.041666668, %v119_v33  ;;  %v223_v27 = vmul.f32 %v863_v30, %v863_v30 }
  0xa6   :  { %v871_v41 = vsub.f32 %v664_v35, %v174_v32  ;;  %v259_v29 = vsel %vm89_vm0, %v222_v38, 0.0  ;;  %v875_v42 = vsub.f32 %v668_v37, %v175_v40  ;;  %v262_v49 = vsel %vm89_vm0, %v223_v27, 0.0 }
  0xa7   :  { %257 = vadd.xlane.f32.xlu0 %v256_v34  ;;  %260 = vadd.xlane.f32.xlu1 %v259_v29  ;;  %v122_v46 = vpop.xlane.xlu0 %121  ;;  %v125_v48 = vpop.xlane.xlu1 %124 }
  0xa8   :  { %v176_v47 = vmul.f32 0.041666668, %v122_v46  ;;  %v224_v50 = vmul.f32 %v871_v41, %v871_v41  ;;  %v177_v52 = vmul.f32 0.041666668, %v125_v48  ;;  %v225_v35 = vmul.f32 %v875_v42, %v875_v42 }
  0xaa   :  { %v883_v56 = vsub.f32 %v684_v43, %v176_v47  ;;  %v265_v37 = vsel %vm89_vm0, %v224_v50, 0.0  ;;  %v887_v57 = vsub.f32 %v688_v45, %v177_v52  ;;  %v268_v63 = vsel %vm89_vm0, %v225_v35, 0.0 }
  0xab   :  { %263 = vadd.xlane.f32.xlu0 %v262_v49  ;;  %266 = vadd.xlane.f32.xlu1 %v265_v37  ;;  %v128_v58 = vpop.xlane.xlu0 %127  ;;  %v131_v62 = vpop.xlane.xlu1 %130 }
  0xac   :  { %v178_v60 = vmul.f32 0.041666668, %v128_v58  ;;  %v226_v1 = vmul.f32 %v883_v56, %v883_v56  ;;  %v179_v7 = vmul.f32 0.041666668, %v131_v62  ;;  %v227_v43 = vmul.f32 %v887_v57, %v887_v57 }
  0xae   :  { %v895_v2 = vsub.f32 %v704_v51, %v178_v60  ;;  %v271_v45 = vsel %vm89_vm0, %v226_v1, 0.0  ;;  %v899_v5 = vsub.f32 %v708_v53, %v179_v7  ;;  %v274_v12 = vsel %vm89_vm0, %v227_v43, 0.0 }
  0xaf   :  { %269 = vadd.xlane.f32.xlu0 %v268_v63  ;;  %272 = vadd.xlane.f32.xlu1 %v271_v45  ;;  %v134_v9 = vpop.xlane.xlu0 %133  ;;  %v137_v11 = vpop.xlane.xlu1 %136 }
  0xb0   :  { %v180_v10 = vmul.f32 0.041666668, %v134_v9  ;;  %v228_v14 = vmul.f32 %v895_v2, %v895_v2  ;;  %v181_v16 = vmul.f32 0.041666668, %v137_v11  ;;  %v229_v51 = vmul.f32 %v899_v5, %v899_v5 }
  0xb2   :  { %v907_v18 = vsub.f32 %v724_v59, %v180_v10  ;;  %v277_v53 = vsel %vm89_vm0, %v228_v14, 0.0  ;;  %v911_v20 = vsub.f32 %v728_v61, %v181_v16  ;;  %v280_v19 = vsel %vm89_vm0, %v229_v51, 0.0 }
  0xb3   :  { %275 = vadd.xlane.f32.xlu0 %v274_v12  ;;  %278 = vadd.xlane.f32.xlu1 %v277_v53  ;;  %v140_v22 = vpop.xlane.xlu0 %139  ;;  %v143_v24 = vpop.xlane.xlu1 %142 }
  0xb4   :  { %v182_v23 = vmul.f32 0.041666668, %v140_v22  ;;  %v230_v21 = vmul.f32 %v907_v18, %v907_v18  ;;  %v183_v31 = vmul.f32 0.041666668, %v143_v24  ;;  %v231_v59 = vmul.f32 %v911_v20, %v911_v20 }
  0xb6   :  { %v919_v32 = vsub.f32 %v744_v4, %v182_v23  ;;  %v283_v61 = vsel %vm89_vm0, %v230_v21, 0.0  ;;  %v923_v33 = vsub.f32 %v748_v6, %v183_v31  ;;  %v286_v27 = vsel %vm89_vm0, %v231_v59, 0.0 }
  0xb7   :  { %281 = vadd.xlane.f32.xlu0 %v280_v19  ;;  %284 = vadd.xlane.f32.xlu1 %v283_v61  ;;  %v146_v34 = vpop.xlane.xlu0 %145  ;;  %v149_v40 = vpop.xlane.xlu1 %148  ;;  %v417_v31 = vlaneseq }
  0xb8   :  { %v184_v38 = vmul.f32 0.041666668, %v146_v34  ;;  %v232_v29 = vmul.f32 %v919_v32, %v919_v32  ;;  %v185_v46 = vmul.f32 0.041666668, %v149_v40  ;;  %v233_v4 = vmul.f32 %v923_v33, %v923_v33 }
  0xb9   :  { %v418_v40 = vshrl.u32 %v417_v31, 7 }
  0xba   :  { %v931_v47 = vsub.f32 %v764_v15, %v184_v38  ;;  %v289_v6 = vsel %vm89_vm0, %v232_v29, 0.0  ;;  %v935_v48 = vsub.f32 %v768_v17, %v185_v46  ;;  %v292_v35 = vsel %vm89_vm0, %v233_v4, 0.0 }
  0xbb   :  { %287 = vadd.xlane.f32.xlu0 %v286_v27  ;;  %290 = vadd.xlane.f32.xlu1 %v289_v6  ;;  %v152_v49 = vpop.xlane.xlu0 %151  ;;  %v155_v52 = vpop.xlane.xlu1 %154 }
  0xbc   :  { %v186_v50 = vmul.f32 0.041666668, %v152_v49  ;;  %v234_v37 = vmul.f32 %v931_v47, %v931_v47  ;;  %v187_v58 = vmul.f32 0.041666668, %v155_v52  ;;  %v235_v15 = vmul.f32 %v935_v48, %v935_v48  ;;  %v391_v52 = vld [vmem:[%s1158_s2] sm:$0x3] }
  0xbe   :  { %v943_v60 = vsub.f32 %v784_v25, %v186_v50  ;;  %v295_v17 = vsel %vm89_vm0, %v234_v37, 0.0  ;;  %v947_v62 = vsub.f32 %v788_v28, %v187_v58  ;;  %v298_v43 = vsel %vm89_vm0, %v235_v15, 0.0 }
  0xbf   :  { %293 = vadd.xlane.f32.xlu0 %v292_v35  ;;  %296 = vadd.xlane.f32.xlu1 %v295_v17  ;;  %v158_v63 = vpop.xlane.xlu0 %157  ;;  %v161_v7 = vpop.xlane.xlu1 %160  ;;  %v419_v50 = vsub.s32 0, %v418_v40  ;;  %v448_v58 = vsub.s32 1, %v418_v40 }
  0xc0   :  { %v188_v1 = vmul.f32 0.041666668, %v158_v63  ;;  %v236_v45 = vmul.f32 %v943_v60, %v943_v60  ;;  %v189_v9 = vmul.f32 0.041666668, %v161_v7  ;;  %v237_v25 = vmul.f32 %v947_v62, %v947_v62 }
  0xc1   :  { %v977_v7 = vrot.slane %v391_v52, %v419_v50 }
  0xc2   :  { %v955_v10 = vsub.f32 %v804_v36, %v188_v1  ;;  %v301_v28 = vsel %vm89_vm0, %v236_v45, 0.0  ;;  %v959_v11 = vsub.f32 %v808_v39, %v189_v9  ;;  %v304_v16 = vsel %vm89_vm0, %v237_v25, 0.0 }
  0xc3   :  { %299 = vadd.xlane.f32.xlu0 %v298_v43  ;;  %302 = vadd.xlane.f32.xlu1 %v301_v28  ;;  %v164_v12 = vpop.xlane.xlu0 %163  ;;  %v979_v25 = vrot.slane %v391_v52, %v448_v58 }
  0xc4   :  { %v190_v14 = vmul.f32 0.041666668, %v164_v12  ;;  %v238_v51 = vmul.f32 %v955_v10, %v955_v10  ;;  %v239_v53 = vmul.f32 %v959_v11, %v959_v11 }
  0xc6   :  { %v967_v36 = vsub.f32 %v818_v44, %v190_v14  ;;  %v307_v22 = vsel %vm89_vm0, %v238_v51, 0.0  ;;  %v310_v39 = vsel %vm89_vm0, %v239_v53, 0.0 }
  0xc7   :  { %305 = vadd.xlane.f32.xlu0 %v304_v16  ;;  %308 = vadd.xlane.f32.xlu1 %v307_v22 }
  0xc8   :  { %v240_v23 = vmul.f32 %v967_v36, %v967_v36 }
  0xca   :  { %v313_v24 = vsel %vm89_vm0, %v240_v23, 0.0 }
  0xcb   :  { %311 = vadd.xlane.f32.xlu0 %v310_v39  ;;  %314 = vadd.xlane.f32.xlu1 %v313_v24 }
 0x128   :  { %v243_v19 = vpop.xlane.xlu1 %242 }
 0x129   :  { %v316_v21 = vmul.f32 0.041666668, %v243_v19 }
 0x12b   :  { %v341_v59 = vadd.f32 1e-05, %v316_v21 }
 0x12c   :  { %v249_v61 = vpop.xlane.xlu1 %248  ;;  %v246_v44 = vpop.xlane.xlu0 %245 }
 0x12d   :  { %504 = vrsqrt.f32 %v341_v59  ;;  %v318_v34 = vmul.f32 0.041666668, %v249_v61  ;;  %v317_v38 = vmul.f32 0.041666668, %v246_v44 }
 0x12f   :  { %v343_v27 = vadd.f32 1e-05, %v318_v34  ;;  %v342_v29 = vadd.f32 1e-05, %v317_v38 }
 0x130   :  { %v255_v46 = vpop.xlane.xlu1 %254  ;;  %v252_v4 = vpop.xlane.xlu0 %251 }
 0x131   :  { %506 = vrsqrt.f32 %v343_v27  ;;  %v320_v6 = vmul.f32 0.041666668, %v255_v46  ;;  %v319_v49 = vmul.f32 0.041666668, %v252_v4 }
 0x132   :  { %508 = vrsqrt.f32 %v342_v29 }
 0x133   :  { %v345_v35 = vadd.f32 1e-05, %v320_v6  ;;  %v344_v37 = vadd.f32 1e-05, %v319_v49 }
 0x134   :  { %v261_v15 = vpop.xlane.xlu1 %260  ;;  %v258_v17 = vpop.xlane.xlu0 %257 }
 0x135   :  { %510 = vrsqrt.f32 %v345_v35  ;;  %v322_v63 = vmul.f32 0.041666668, %v261_v15  ;;  %v321_v1 = vmul.f32 0.041666668, %v258_v17 }
 0x136   :  { %512 = vrsqrt.f32 %v344_v37 }
 0x137   :  { %v505_v43 = vpop.eup %504  ;;  %v347_v45 = vadd.f32 1e-05, %v322_v63  ;;  %v346_v9 = vadd.f32 1e-05, %v321_v1 }
 0x138   :  { %v392_v28 = vmul.f32 %v505_v43, %v825_v54  ;;  %v267_v12 = vpop.xlane.xlu1 %266  ;;  %v264_v14 = vpop.xlane.xlu0 %263 }
 0x139   :  { %514 = vrsqrt.f32 %v347_v45  ;;  %v324_v16 = vmul.f32 0.041666668, %v267_v12  ;;  %v323_v51 = vmul.f32 0.041666668, %v264_v14 }
 0x13a   :  { %v421_v53 = vmul.f32 %v977_v7, %v392_v28  ;;  %516 = vrsqrt.f32 %v346_v9 }
 0x13b   :  { %v507_v22 = vpop.eup %506  ;;  %v349_v39 = vadd.f32 1e-05, %v324_v16  ;;  %v348_v23 = vadd.f32 1e-05, %v323_v51 }
 0x13c   :  { %v509_v24 = vpop.eup %508  ;;  %v450_v19 = vadd.f32 %v979_v25, %v421_v53  ;;  %v394_v21 = vmul.f32 %v507_v22, %v828_v55  ;;  %v273_v31 = vpop.xlane.xlu1 %272 }
 0x13d   :  { %v270_v59 = vpop.xlane.xlu0 %269  ;;  %v393_v54 = vmul.f32 %v509_v24, %v835_v0  ;;  %518 = vrsqrt.f32 %v349_v39  ;;  %v326_v61 = vmul.f32 0.041666668, %v273_v31 }
 0x13e   :  { %v325_v44 = vmul.f32 0.041666668, %v270_v59  ;;  %475 = vst.msk [vmem:[%s1159_s3] sm:$0xff] %vm89_vm0, %v450_v19  ;;  %v423_v34 = vmul.f32 %v977_v7, %v394_v21  ;;  %520 = vrsqrt.f32 %v348_v23 }
 0x13f   :  { %v511_v38 = vpop.eup %510  ;;  %v422_v40 = vmul.f32 %v977_v7, %v393_v54  ;;  %v351_v27 = vadd.f32 1e-05, %v326_v61 }
 0x140   :  { %v350_v55 = vadd.f32 1e-05, %v325_v44  ;;  %v513_v29 = vpop.eup %512  ;;  %v452_v46 = vadd.f32 %v979_v25, %v423_v34  ;;  %v396_v0 = vmul.f32 %v511_v38, %v847_v8  ;;  %v279_v4 = vpop.xlane.xlu1 %278 }
 0x141   :  { %v276_v6 = vpop.xlane.xlu0 %275  ;;  %v451_v49 = vadd.f32 %v979_v25, %v422_v40  ;;  %v395_v50 = vmul.f32 %v513_v29, %v839_v3  ;;  %522 = vrsqrt.f32 %v351_v27  ;;  %v328_v52 = vmul.f32 0.041666668, %v279_v4 }
 0x142   :  { %477 = vst.msk [vmem:[%s1159_s3 + $0x10] sm:$0xff] %vm89_vm0, %v452_v46  ;;  %v425_v35 = vmul.f32 %v977_v7, %v396_v0  ;;  %524 = vrsqrt.f32 %v350_v55  ;;  %v327_v37 = vmul.f32 0.041666668, %v276_v6 }
 0x143   :  { %v515_v58 = vpop.eup %514  ;;  %476 = vst.msk [vmem:[%s1159_s3 + $0x8] sm:$0xff] %vm89_vm0, %v451_v49  ;;  %v424_v8 = vmul.f32 %v977_v7, %v395_v50  ;;  %v353_v3 = vadd.f32 1e-05, %v328_v52 }
 0x144   :  { %v517_v15 = vpop.eup %516  ;;  %v454_v17 = vadd.f32 %v979_v25, %v425_v35  ;;  %v398_v63 = vmul.f32 %v515_v58, %v859_v26  ;;  %v352_v1 = vadd.f32 1e-05, %v327_v37  ;;  %v285_v43 = vpop.xlane.xlu1 %284 }
 0x145   :  { %v282_v45 = vpop.xlane.xlu0 %281  ;;  %v453_v9 = vadd.f32 %v979_v25, %v424_v8  ;;  %v397_v28 = vmul.f32 %v517_v15, %v851_v13  ;;  %526 = vrsqrt.f32 %v353_v3  ;;  %v330_v12 = vmul.f32 0.041666668, %v285_v43 }
 0x146   :  { %479 = vst.msk [vmem:[%s1159_s3 + $0x20] sm:$0xff] %vm89_vm0, %v454_v17  ;;  %v427_v14 = vmul.f32 %v977_v7, %v398_v63  ;;  %528 = vrsqrt.f32 %v352_v1  ;;  %v329_v16 = vmul.f32 0.041666668, %v282_v45 }
 0x147   :  { %v519_v51 = vpop.eup %518  ;;  %478 = vst.msk [vmem:[%s1159_s3 + $0x18] sm:$0xff] %vm89_vm0, %v453_v9  ;;  %v426_v26 = vmul.f32 %v977_v7, %v397_v28  ;;  %v355_v13 = vadd.f32 1e-05, %v330_v12 }
 0x148   :  { %v521_v53 = vpop.eup %520  ;;  %v456_v22 = vadd.f32 %v979_v25, %v427_v14  ;;  %v400_v39 = vmul.f32 %v519_v51, %v871_v41  ;;  %v354_v23 = vadd.f32 1e-05, %v329_v16  ;;  %v291_v24 = vpop.xlane.xlu1 %290 }
 0x149   :  { %v288_v19 = vpop.xlane.xlu0 %287  ;;  %v455_v21 = vadd.f32 %v979_v25, %v426_v26  ;;  %v399_v31 = vmul.f32 %v521_v53, %v863_v30  ;;  %530 = vrsqrt.f32 %v355_v13  ;;  %v332_v59 = vmul.f32 0.041666668, %v291_v24 }
 0x14a   :  { %481 = vst.msk [vmem:[%s1159_s3 + $0x30] sm:$0xff] %vm89_vm0, %v456_v22  ;;  %v429_v54 = vmul.f32 %v977_v7, %v400_v39  ;;  %532 = vrsqrt.f32 %v354_v23  ;;  %v331_v61 = vmul.f32 0.041666668, %v288_v19 }
 0x14b   :  { %v523_v44 = vpop.eup %522  ;;  %480 = vst.msk [vmem:[%s1159_s3 + $0x28] sm:$0xff] %vm89_vm0, %v455_v21  ;;  %v428_v41 = vmul.f32 %v977_v7, %v399_v31  ;;  %v357_v30 = vadd.f32 1e-05, %v332_v59 }
 0x14c   :  { %v525_v34 = vpop.eup %524  ;;  %v458_v38 = vadd.f32 %v979_v25, %v429_v54  ;;  %v402_v40 = vmul.f32 %v523_v44, %v883_v56  ;;  %v356_v27 = vadd.f32 1e-05, %v331_v61  ;;  %v297_v55 = vpop.xlane.xlu1 %296 }
 0x14d   :  { %v294_v29 = vpop.xlane.xlu0 %293  ;;  %v457_v46 = vadd.f32 %v979_v25, %v428_v41  ;;  %v401_v0 = vmul.f32 %v525_v34, %v875_v42  ;;  %534 = vrsqrt.f32 %v357_v30  ;;  %v334_v4 = vmul.f32 0.041666668, %v297_v55 }
 0x14e   :  { %483 = vst.msk [vmem:[%s1159_s3 + $0x40] sm:$0xff] %vm89_vm0, %v458_v38  ;;  %v431_v6 = vmul.f32 %v977_v7, %v402_v40  ;;  %536 = vrsqrt.f32 %v356_v27  ;;  %v333_v49 = vmul.f32 0.041666668, %v294_v29 }
 0x14f   :  { %v527_v50 = vpop.eup %526  ;;  %482 = vst.msk [vmem:[%s1159_s3 + $0x38] sm:$0xff] %vm89_vm0, %v457_v46  ;;  %v430_v56 = vmul.f32 %v977_v7, %v401_v0  ;;  %v359_v42 = vadd.f32 1e-05, %v334_v4 }
 0x150   :  { %v529_v52 = vpop.eup %528  ;;  %v460_v35 = vadd.f32 %v979_v25, %v431_v6  ;;  %v404_v37 = vmul.f32 %v527_v50, %v895_v2  ;;  %v358_v58 = vadd.f32 1e-05, %v333_v49  ;;  %v303_v8 = vpop.xlane.xlu1 %302 }
 0x151   :  { %v300_v3 = vpop.xlane.xlu0 %299  ;;  %v459_v15 = vadd.f32 %v979_v25, %v430_v56  ;;  %v403_v17 = vmul.f32 %v529_v52, %v887_v57  ;;  %538 = vrsqrt.f32 %v359_v42  ;;  %v336_v63 = vmul.f32 0.041666668, %v303_v8 }
 0x152   :  { %485 = vst.msk [vmem:[%s1159_s3 + $0x50] sm:$0xff] %vm89_vm0, %v460_v35  ;;  %v433_v1 = vmul.f32 %v977_v7, %v404_v37  ;;  %540 = vrsqrt.f32 %v358_v58  ;;  %v335_v43 = vmul.f32 0.041666668, %v300_v3 }
 0x153   :  { %v531_v45 = vpop.eup %530  ;;  %484 = vst.msk [vmem:[%s1159_s3 + $0x48] sm:$0xff] %vm89_vm0, %v459_v15  ;;  %v432_v2 = vmul.f32 %v977_v7, %v403_v17  ;;  %v361_v57 = vadd.f32 1e-05, %v336_v63 }
 0x154   :  { %v533_v9 = vpop.eup %532  ;;  %v462_v28 = vadd.f32 %v979_v25, %v433_v1  ;;  %v406_v12 = vmul.f32 %v531_v45, %v907_v18  ;;  %v360_v14 = vadd.f32 1e-05, %v335_v43  ;;  %v309_v16 = vpop.xlane.xlu1 %308 }
 0x155   :  { %v306_v51 = vpop.xlane.xlu0 %305  ;;  %v461_v26 = vadd.f32 %v979_v25, %v432_v2  ;;  %v405_v13 = vmul.f32 %v533_v9, %v899_v5  ;;  %542 = vrsqrt.f32 %v361_v57  ;;  %v338_v53 = vmul.f32 0.041666668, %v309_v16 }
 0x156   :  { %487 = vst.msk [vmem:[%s1159_s3 + $0x60] sm:$0xff] %vm89_vm0, %v462_v28  ;;  %v435_v22 = vmul.f32 %v977_v7, %v406_v12  ;;  %544 = vrsqrt.f32 %v360_v14  ;;  %v337_v39 = vmul.f32 0.041666668, %v306_v51 }
 0x157   :  { %v535_v23 = vpop.eup %534  ;;  %486 = vst.msk [vmem:[%s1159_s3 + $0x58] sm:$0xff] %vm89_vm0, %v461_v26  ;;  %v434_v18 = vmul.f32 %v977_v7, %v405_v13  ;;  %v363_v5 = vadd.f32 1e-05, %v338_v53 }
 0x158   :  { %v537_v24 = vpop.eup %536  ;;  %v464_v19 = vadd.f32 %v979_v25, %v435_v22  ;;  %v408_v21 = vmul.f32 %v535_v23, %v919_v32  ;;  %v362_v31 = vadd.f32 1e-05, %v337_v39  ;;  %v315_v59 = vpop.xlane.xlu1 %314 }
 0x159   :  { %v312_v54 = vpop.xlane.xlu0 %311  ;;  %v463_v61 = vadd.f32 %v979_v25, %v434_v18  ;;  %v407_v44 = vmul.f32 %v537_v24, %v911_v20  ;;  %546 = vrsqrt.f32 %v363_v5  ;;  %v340_v41 = vmul.f32 0.041666668, %v315_v59 }
 0x15a   :  { %489 = vst.msk [vmem:[%s1159_s3 + $0x70] sm:$0xff] %vm89_vm0, %v464_v19  ;;  %v437_v30 = vmul.f32 %v977_v7, %v408_v21  ;;  %548 = vrsqrt.f32 %v362_v31  ;;  %v339_v34 = vmul.f32 0.041666668, %v312_v54 }
 0x15b   :  { %v539_v38 = vpop.eup %538  ;;  %488 = vst.msk [vmem:[%s1159_s3 + $0x68] sm:$0xff] %vm89_vm0, %v463_v61  ;;  %v436_v32 = vmul.f32 %v977_v7, %v407_v44  ;;  %v365_v20 = vadd.f32 1e-05, %v340_v41 }
 0x15c   :  { %v541_v40 = vpop.eup %540  ;;  %v466_v27 = vadd.f32 %v979_v25, %v437_v30  ;;  %v410_v55 = vmul.f32 %v539_v38, %v931_v47  ;;  %v364_v29 = vadd.f32 1e-05, %v339_v34 }
 0x15d   :  { %v465_v46 = vadd.f32 %v979_v25, %v436_v32  ;;  %v409_v0 = vmul.f32 %v541_v40, %v923_v33  ;;  %550 = vrsqrt.f32 %v365_v20 }
 0x15e   :  { %491 = vst.msk [vmem:[%s1159_s3 + $0x80] sm:$0xff] %vm89_vm0, %v466_v27  ;;  %v439_v4 = vmul.f32 %v977_v7, %v410_v55  ;;  %552 = vrsqrt.f32 %v364_v29 }
 0x15f   :  { %v543_v6 = vpop.eup %542  ;;  %490 = vst.msk [vmem:[%s1159_s3 + $0x78] sm:$0xff] %vm89_vm0, %v465_v46  ;;  %v438_v47 = vmul.f32 %v977_v7, %v409_v0 }
 0x160   :  { %v545_v49 = vpop.eup %544  ;;  %v468_v33 = vadd.f32 %v979_v25, %v439_v4  ;;  %v412_v50 = vmul.f32 %v543_v6, %v943_v60 }
 0x161   :  { %v467_v56 = vadd.f32 %v979_v25, %v438_v47  ;;  %v411_v42 = vmul.f32 %v545_v49, %v935_v48 }
 0x162   :  { %493 = vst.msk [vmem:[%s1159_s3 + $0x90] sm:$0xff] %vm89_vm0, %v468_v33  ;;  %v441_v52 = vmul.f32 %v977_v7, %v412_v50 }
 0x163   :  { %v547_v35 = vpop.eup %546  ;;  %492 = vst.msk [vmem:[%s1159_s3 + $0x88] sm:$0xff] %vm89_vm0, %v467_v56  ;;  %v440_v37 = vmul.f32 %v977_v7, %v411_v42 }
 0x164   :  { %v549_v60 = vpop.eup %548  ;;  %v470_v58 = vadd.f32 %v979_v25, %v441_v52  ;;  %v414_v48 = vmul.f32 %v547_v35, %v955_v10 }
 0x165   :  { %v469_v8 = vadd.f32 %v979_v25, %v440_v37  ;;  %v413_v3 = vmul.f32 %v549_v60, %v947_v62 }
 0x166   :  { %495 = vst.msk [vmem:[%s1159_s3 + $0xa0] sm:$0xff] %vm89_vm0, %v470_v58  ;;  %v443_v15 = vmul.f32 %v977_v7, %v414_v48 }
 0x167   :  { %v551_v17 = vpop.eup %550  ;;  %494 = vst.msk [vmem:[%s1159_s3 + $0x98] sm:$0xff] %vm89_vm0, %v469_v8  ;;  %v442_v63 = vmul.f32 %v977_v7, %v413_v3 }
 0x168   :  { %v553_v10 = vpop.eup %552  ;;  %v472_v1 = vadd.f32 %v979_v25, %v443_v15  ;;  %v416_v62 = vmul.f32 %v551_v17, %v967_v36 }
 0x169   :  { %v471_v43 = vadd.f32 %v979_v25, %v442_v63  ;;  %v415_v45 = vmul.f32 %v553_v10, %v959_v11 }
 0x16a   :  { %497 = vst.msk [vmem:[%s1159_s3 + $0xb0] sm:$0xff] %vm89_vm0, %v472_v1  ;;  %v445_v2 = vmul.f32 %v977_v7, %v416_v62 }
 0x16b   :  { %496 = vst.msk [vmem:[%s1159_s3 + $0xa8] sm:$0xff] %vm89_vm0, %v471_v43  ;;  %v444_v57 = vmul.f32 %v977_v7, %v415_v45 }
 0x16c   :  { %v474_v36 = vadd.f32 %v979_v25, %v445_v2 }
 0x16d   :  { %v473_v9 = vadd.f32 %v979_v25, %v444_v57 }
 0x16e   :  { %499 = vst.msk [vmem:[%s1159_s3 + $0xc0] sm:$0xff] %vm89_vm0, %v474_v36 }
 0x16f   :  { %498 = vst.msk [vmem:[%s1159_s3 + $0xb8] sm:$0xff] %vm89_vm0, %v473_v9 }

</bundles_post_ra>
